<compile_context>
chip_gen: v7x
topology: tpu7x:2x2x1
jax: 0.10.0
libtpu: 0.0.40
codegen_flags: <defaults>
</compile_context>

<pallas_src>
import math
import jax
import jax.numpy as jnp
from jax.experimental import pallas as pl
from jax.experimental.pallas import tpu as pltpu

EPS = 1e-06
LOG_SIG_MAX = 2.0
LOG_SIG_MIN = -5.0


def _make_cql_forward(B, S, H, A, action_max=1.0, action_min=-1.0, TB=None):
    """Builds a pallas_call-backed forward. Weights stay VMEM-resident across batch tiles."""
    action_scale = (action_max - action_min) / 2.0
    action_bias = (action_max + action_min) / 2.0
    half_log_2pi = 0.5 * math.log(2.0 * math.pi)

    # Batch tile: multiple of 8 sublanes; 256 rows fills the MXU feed on v6e/v7x.
    if TB is None:
        TB = min(B, 256)
    assert B % TB == 0 and TB % 8 == 0, "batch must tile into multiples of 8"
    grid = (B // TB,)

    P = 3 * A + 1  # packed output columns: [probs(2A) | action(A) | log_prob(1)]

    def kernel(state_ref, eps_ref,
               w1_ref, b1_ref, w2_ref, b2_ref, wh_ref, bh_ref,
               out_ref):
        x = state_ref[...]                                               # (TB, S) f32

        # --- policy embedding MLP (MXU matmuls + VPU relu) ---
        h = jnp.dot(x, w1_ref[...], preferred_element_type=jnp.float32) + b1_ref[...]
        h = jnp.maximum(h, 0.0)
        h = jnp.dot(h, w2_ref[...], preferred_element_type=jnp.float32) + b2_ref[...]
        h = jnp.maximum(h, 0.0)                                          # (TB, H)

        # --- fused mean|log_std head: one matmul, result is `probs` directly ---
        heads = jnp.dot(h, wh_ref[...], preferred_element_type=jnp.float32) + bh_ref[...]
        out_ref[:, : 2 * A] = heads                                      # probs (raw)

        mean = heads[:, :A]
        log_std = heads[:, A: 2 * A]

        # --- tanh-squashed gaussian sample (reparameterized with provided eps) ---
        log_std_c = jnp.clip(log_std, LOG_SIG_MIN, LOG_SIG_MAX)
        std = jnp.exp(log_std_c)                                         # EUP
        eps = eps_ref[...]
        x_t = mean + std * eps
        y_t = jnp.tanh(x_t)                                              # EUP
        out_ref[:, 2 * A: 3 * A] = y_t * action_scale + action_bias      # action

        # Normal(mean, std).log_prob(x_t) with (x_t - mean)/std == eps, constant folded.
        lp = (-0.5) * eps * eps - log_std_c - half_log_2pi
        lp = lp - jnp.log(action_scale * (1.0 - y_t * y_t) + EPS)
        out_ref[:, 3 * A: 3 * A + 1] = jnp.sum(lp, axis=1, keepdims=True)

    batch_spec = lambda cols: pl.BlockSpec((TB, cols), lambda i: (i, 0))
    const_spec = lambda shape: pl.BlockSpec(shape, lambda i: (0, 0))   # VMEM-resident weights

    in_specs = [
        batch_spec(S),              # state
        batch_spec(A),              # eps
        const_spec((S, H)), const_spec((1, H)),       # W1, b1
        const_spec((H, H)), const_spec((1, H)),       # W2, b2
        const_spec((H, 2 * A)), const_spec((1, 2 * A)),  # fused head W, b
    ]
    out_specs = batch_spec(P)
    out_shape = jax.ShapeDtypeStruct((B, P), jnp.float32)

    call = pl.pallas_call(
        kernel,
        out_shape=out_shape,
        grid=grid,
        in_specs=in_specs,
        out_specs=out_specs,
        compiler_params=pltpu.CompilerParams(
            dimension_semantics=("parallel",)),   # shards batch tiles across TCs on v7x
    )

    def forward(state, eps, params):
        packed = call(
            state, eps,
            params["w1"], params["b1"], params["w2"], params["b2"],
            params["w_head"], params["b_head"],
        )
        probs = packed[:, : 2 * A]
        action = packed[:, 2 * A: 3 * A]
        log_prob = packed[:, 3 * A: 3 * A + 1]
        # matches torch return signature (action, log_prob, probs, None)
        return action, log_prob, probs, None

    return forward


def _init_params(key, S, H, A):
    """Deterministic PyTorch-Linear-style init (uniform +/- 1/sqrt(fan_in))."""
    ks = jax.random.split(key, 8)

    def lin(kw, kb, fan_in, fan_out):
        bound = 1.0 / math.sqrt(fan_in)
        w = jax.random.uniform(kw, (fan_in, fan_out), jnp.float32, -bound, bound)
        b = jax.random.uniform(kb, (1, fan_out), jnp.float32, -bound, bound)
        return w, b

    w1, b1 = lin(ks[0], ks[1], S, H)
    w2, b2 = lin(ks[2], ks[3], H, H)
    wm, bm = lin(ks[4], ks[5], H, A)
    ws, bs = lin(ks[6], ks[7], H, A)
    # Host-side fusion of the two heads into one (H, 2A) matmul.
    w_head = jnp.concatenate([wm, ws], axis=1)
    b_head = jnp.concatenate([bm, bs], axis=1)
    return dict(w1=w1, b1=b1, w2=w2, b2=b2,
                wm=wm, bm=bm, ws=ws, bs=bs,
                w_head=w_head, b_head=b_head)


def _reference_forward(state, eps, p):
    """Pure-JAX reference mirroring the PyTorch forward (gaussian branch, scale=1, bias=0)."""
    h = jnp.maximum(state @ p["w1"] + p["b1"], 0.0)
    h = jnp.maximum(h @ p["w2"] + p["b2"], 0.0)
    mean = h @ p["wm"] + p["bm"]
    log_std = h @ p["ws"] + p["bs"]
    probs = jnp.concatenate([mean, log_std], axis=1)
    log_std_c = jnp.clip(log_std, LOG_SIG_MIN, LOG_SIG_MAX)
    std = jnp.exp(log_std_c)
    x_t = mean + std * eps
    y_t = jnp.tanh(x_t)
    action = y_t * 1.0 + 0.0
    lp = -0.5 * eps * eps - log_std_c - 0.5 * math.log(2.0 * math.pi)
    lp = lp - jnp.log(1.0 * (1.0 - y_t * y_t) + EPS)
    log_prob = jnp.sum(lp, axis=1, keepdims=True)
    return action, log_prob, probs


if __name__ == "__main__":
    # Small shapes consistent with the module: state_dim=16, hidden=32, action_size=4.
    B, S, H, A = 8, 16, 32, 4

    key = jax.random.PRNGKey(0)
    k_state, k_eps, k_params = jax.random.split(key, 3)

    state = jax.random.normal(k_state, (B, S), jnp.float32)
    eps = jax.random.normal(k_eps, (B, A), jnp.float32)   # deterministic rsample noise
    params = _init_params(k_params, S, H, A)

    forward = _make_cql_forward(B, S, H, A)
    action, log_prob, probs, _ = forward(state, eps, params)
    jax.block_until_ready((action, log_prob, probs))

    # sanity check against pure-JAX reference
    a_ref, lp_ref, pr_ref = _reference_forward(state, eps, params)
    assert jnp.allclose(action, a_ref, atol=1e-5, rtol=1e-5)
    assert jnp.allclose(log_prob, lp_ref, atol=1e-4, rtol=1e-4)
    assert jnp.allclose(probs, pr_ref, atol=1e-5, rtol=1e-5)

    # TODO(synk): the 'beta' distribution branch of CQLAgent.forward is not implemented
    # (only the default 'gaussian' path, matching the module's default arguments).
    print("KERNEL_OK")
</pallas_src>

<mosaic_0001>
module attributes {stable_mosaic.version = 11 : i64} {
  func.func @kernel(%arg0: i32, %arg1: memref<8x16xf32, #tpu.memory_space<vmem>>, %arg2: memref<8x4xf32, #tpu.memory_space<vmem>>, %arg3: memref<16x32xf32, #tpu.memory_space<vmem>>, %arg4: memref<1x32xf32, #tpu.memory_space<vmem>>, %arg5: memref<32x32xf32, #tpu.memory_space<vmem>>, %arg6: memref<1x32xf32, #tpu.memory_space<vmem>>, %arg7: memref<32x8xf32, #tpu.memory_space<vmem>>, %arg8: memref<1x8xf32, #tpu.memory_space<vmem>>, %arg9: memref<8x13xf32, #tpu.memory_space<vmem>>) attributes {dimension_semantics = [#tpu.dimension_semantics<parallel>], iteration_bounds = array<i64: 1>, scalar_prefetch = 0 : i64, scratch_operands = 0 : i64, tpu.core_type = #tpu.core_type<tc>, window_params = [{transform_indices = @transform_0, window_bounds = array<i64: 8, 16>}, {transform_indices = @transform_1, window_bounds = array<i64: 8, 4>}, {pipeline_mode = #tpu.pipeline_mode<synchronous>, transform_indices = @transform_2, window_bounds = array<i64: 16, 32>}, {pipeline_mode = #tpu.pipeline_mode<synchronous>, transform_indices = @transform_3, window_bounds = array<i64: 1, 32>}, {pipeline_mode = #tpu.pipeline_mode<synchronous>, transform_indices = @transform_4, window_bounds = array<i64: 32, 32>}, {pipeline_mode = #tpu.pipeline_mode<synchronous>, transform_indices = @transform_5, window_bounds = array<i64: 1, 32>}, {pipeline_mode = #tpu.pipeline_mode<synchronous>, transform_indices = @transform_6, window_bounds = array<i64: 32, 8>}, {pipeline_mode = #tpu.pipeline_mode<synchronous>, transform_indices = @transform_7, window_bounds = array<i64: 1, 8>}, {transform_indices = @transform_8, window_bounds = array<i64: 8, 13>}]} {
    %c0 = arith.constant 0 : index
    %c0_0 = arith.constant 0 : index
    %0 = vector.load %arg1[%c0, %c0_0] : memref<8x16xf32, #tpu.memory_space<vmem>>, vector<8x16xf32>
    %c0_1 = arith.constant 0 : index
    %c0_2 = arith.constant 0 : index
    %1 = vector.load %arg3[%c0_1, %c0_2] : memref<16x32xf32, #tpu.memory_space<vmem>>, vector<16x32xf32>
    %cst = arith.constant dense<0.000000e+00> : vector<8x32xf32>
    %2 = tpu.matmul %0, %1, %cst {dimension_numbers = #tpu.dot_dimension_numbers<[1], [0], [0], [1], [0, 0, 1, 1], [], []>} : vector<8x16xf32>, vector<16x32xf32>, vector<8x32xf32> -> vector<8x32xf32>
    %c0_3 = arith.constant 0 : index
    %c0_4 = arith.constant 0 : index
    %3 = vector.load %arg4[%c0_3, %c0_4] : memref<1x32xf32, #tpu.memory_space<vmem>>, vector<1x32xf32>
    %4 = vector.broadcast %3 : vector<1x32xf32> to vector<8x32xf32>
    %5 = arith.addf %2, %4 : vector<8x32xf32>
    %cst_5 = arith.constant 0.000000e+00 : f32
    %6 = vector.broadcast %cst_5 : f32 to vector<8x32xf32>
    %7 = arith.maximumf %5, %6 : vector<8x32xf32>
    %c0_6 = arith.constant 0 : index
    %c0_7 = arith.constant 0 : index
    %8 = vector.load %arg5[%c0_6, %c0_7] : memref<32x32xf32, #tpu.memory_space<vmem>>, vector<32x32xf32>
    %cst_8 = arith.constant dense<0.000000e+00> : vector<8x32xf32>
    %9 = tpu.matmul %7, %8, %cst_8 {dimension_numbers = #tpu.dot_dimension_numbers<[1], [0], [0], [1], [0, 0, 1, 1], [], []>} : vector<8x32xf32>, vector<32x32xf32>, vector<8x32xf32> -> vector<8x32xf32>
    %c0_9 = arith.constant 0 : index
    %c0_10 = arith.constant 0 : index
    %10 = vector.load %arg6[%c0_9, %c0_10] : memref<1x32xf32, #tpu.memory_space<vmem>>, vector<1x32xf32>
    %11 = vector.broadcast %10 : vector<1x32xf32> to vector<8x32xf32>
    %12 = arith.addf %9, %11 : vector<8x32xf32>
    %cst_11 = arith.constant 0.000000e+00 : f32
    %13 = vector.broadcast %cst_11 : f32 to vector<8x32xf32>
    %14 = arith.maximumf %12, %13 : vector<8x32xf32>
    %c0_12 = arith.constant 0 : index
    %c0_13 = arith.constant 0 : index
    %15 = vector.load %arg7[%c0_12, %c0_13] : memref<32x8xf32, #tpu.memory_space<vmem>>, vector<32x8xf32>
    %cst_14 = arith.constant dense<0.000000e+00> : vector<8x8xf32>
    %16 = tpu.matmul %14, %15, %cst_14 {dimension_numbers = #tpu.dot_dimension_numbers<[1], [0], [0], [1], [0, 0, 1, 1], [], []>} : vector<8x32xf32>, vector<32x8xf32>, vector<8x8xf32> -> vector<8x8xf32>
    %c0_15 = arith.constant 0 : index
    %c0_16 = arith.constant 0 : index
    %17 = vector.load %arg8[%c0_15, %c0_16] : memref<1x8xf32, #tpu.memory_space<vmem>>, vector<1x8xf32>
    %18 = vector.broadcast %17 : vector<1x8xf32> to vector<8x8xf32>
    %19 = arith.addf %16, %18 : vector<8x8xf32>
    %c0_17 = arith.constant 0 : index
    %c0_18 = arith.constant 0 : index
    %20 = vector.load %arg9[%c0_17, %c0_18] : memref<8x13xf32, #tpu.memory_space<vmem>>, vector<8x8xf32>
    tpu.vector_store %arg9[%c0_17, %c0_18], %19 {strides = array<i32>} : memref<8x13xf32, #tpu.memory_space<vmem>>, vector<8x8xf32>,
    %21 = vector.extract_strided_slice %19 {offsets = [0, 0], sizes = [8, 4], strides = [1, 1]} : vector<8x8xf32> to vector<8x4xf32>
    %22 = vector.extract_strided_slice %19 {offsets = [0, 4], sizes = [8, 4], strides = [1, 1]} : vector<8x8xf32> to vector<8x4xf32>
    %cst_19 = arith.constant -5.000000e+00 : f32
    %cst_20 = arith.constant 2.000000e+00 : f32
    %23 = vector.broadcast %cst_19 : f32 to vector<8x4xf32>
    %24 = arith.maximumf %23, %22 : vector<8x4xf32>
    %25 = vector.broadcast %cst_20 : f32 to vector<8x4xf32>
    %26 = arith.minimumf %25, %24 : vector<8x4xf32>
    %27 = math.exp %26 : vector<8x4xf32>
    %c0_21 = arith.constant 0 : index
    %c0_22 = arith.constant 0 : index
    %28 = vector.load %arg2[%c0_21, %c0_22] : memref<8x4xf32, #tpu.memory_space<vmem>>, vector<8x4xf32>
    %29 = arith.mulf %27, %28 : vector<8x4xf32>
    %30 = arith.addf %21, %29 : vector<8x4xf32>
    %31 = math.tanh %30 : vector<8x4xf32>
    %cst_23 = arith.constant 1.000000e+00 : f32
    %32 = vector.broadcast %cst_23 : f32 to vector<8x4xf32>
    %33 = arith.mulf %31, %32 : vector<8x4xf32>
    %cst_24 = arith.constant 0.000000e+00 : f32
    %34 = vector.broadcast %cst_24 : f32 to vector<8x4xf32>
    %35 = arith.addf %33, %34 : vector<8x4xf32>
    %c0_25 = arith.constant 0 : index
    %c8 = arith.constant 8 : index
    %36 = vector.load %arg9[%c0_25, %c8] : memref<8x13xf32, #tpu.memory_space<vmem>>, vector<8x4xf32>
    tpu.vector_store %arg9[%c0_25, %c8], %35 {strides = array<i32>} : memref<8x13xf32, #tpu.memory_space<vmem>>, vector<8x4xf32>,
    %cst_26 = arith.constant -5.000000e-01 : f32
    %37 = vector.broadcast %cst_26 : f32 to vector<8x4xf32>
    %38 = arith.mulf %37, %28 : vector<8x4xf32>
    %39 = arith.mulf %38, %28 : vector<8x4xf32>
    %40 = arith.subf %39, %26 : vector<8x4xf32>
    %cst_27 = arith.constant 0.918938517 : f32
    %41 = vector.broadcast %cst_27 : f32 to vector<8x4xf32>
    %42 = arith.subf %40, %41 : vector<8x4xf32>
    %43 = arith.mulf %31, %31 : vector<8x4xf32>
    %cst_28 = arith.constant 1.000000e+00 : f32
    %44 = vector.broadcast %cst_28 : f32 to vector<8x4xf32>
    %45 = arith.subf %44, %43 : vector<8x4xf32>
    %cst_29 = arith.constant 1.000000e+00 : f32
    %46 = vector.broadcast %cst_29 : f32 to vector<8x4xf32>
    %47 = arith.mulf %46, %45 : vector<8x4xf32>
    %cst_30 = arith.constant 9.99999997E-7 : f32
    %48 = vector.broadcast %cst_30 : f32 to vector<8x4xf32>
    %49 = arith.addf %47, %48 : vector<8x4xf32>
    %50 = math.log %49 : vector<8x4xf32>
    %51 = arith.subf %42, %50 : vector<8x4xf32>
    %cst_31 = arith.constant dense<0.000000e+00> : vector<8xf32>
    %52 = vector.multi_reduction <add>, %51, %cst_31 [1] : vector<8x4xf32> to vector<8xf32>
    %53 = vector.shape_cast %52 : vector<8xf32> to vector<8x1xf32>
    %c0_32 = arith.constant 0 : index
    %c12 = arith.constant 12 : index
    %54 = vector.load %arg9[%c0_32, %c12] : memref<8x13xf32, #tpu.memory_space<vmem>>, vector<8x1xf32>
    tpu.vector_store %arg9[%c0_32, %c12], %53 {strides = array<i32>} : memref<8x13xf32, #tpu.memory_space<vmem>>, vector<8x1xf32>,
    return
  }
  func.func @transform_0(%arg0: i32) -> (i32, i32) {
    %c0_i32 = arith.constant 0 : i32
    %c0_i32_0 = arith.constant 0 : i32
    return %arg0, %c0_i32 : i32, i32
  }
  func.func @transform_1(%arg0: i32) -> (i32, i32) {
    %c0_i32 = arith.constant 0 : i32
    %c0_i32_0 = arith.constant 0 : i32
    return %arg0, %c0_i32 : i32, i32
  }
  func.func @transform_2(%arg0: i32) -> (i32, i32) {
    %c0_i32 = arith.constant 0 : i32
    %c0_i32_0 = arith.constant 0 : i32
    %c0_i32_1 = arith.constant 0 : i32
    return %c0_i32, %c0_i32_0 : i32, i32
  }
  func.func @transform_3(%arg0: i32) -> (i32, i32) {
    %c0_i32 = arith.constant 0 : i32
    %c0_i32_0 = arith.constant 0 : i32
    %c0_i32_1 = arith.constant 0 : i32
    return %c0_i32, %c0_i32_0 : i32, i32
  }
  func.func @transform_4(%arg0: i32) -> (i32, i32) {
    %c0_i32 = arith.constant 0 : i32
    %c0_i32_0 = arith.constant 0 : i32
    %c0_i32_1 = arith.constant 0 : i32
    return %c0_i32, %c0_i32_0 : i32, i32
  }
  func.func @transform_5(%arg0: i32) -> (i32, i32) {
    %c0_i32 = arith.constant 0 : i32
    %c0_i32_0 = arith.constant 0 : i32
    %c0_i32_1 = arith.constant 0 : i32
    return %c0_i32, %c0_i32_0 : i32, i32
  }
  func.func @transform_6(%arg0: i32) -> (i32, i32) {
    %c0_i32 = arith.constant 0 : i32
    %c0_i32_0 = arith.constant 0 : i32
    %c0_i32_1 = arith.constant 0 : i32
    return %c0_i32, %c0_i32_0 : i32, i32
  }
  func.func @transform_7(%arg0: i32) -> (i32, i32) {
    %c0_i32 = arith.constant 0 : i32
    %c0_i32_0 = arith.constant 0 : i32
    %c0_i32_1 = arith.constant 0 : i32
    return %c0_i32, %c0_i32_0 : i32, i32
  }
  func.func @transform_8(%arg0: i32) -> (i32, i32) {
    %c0_i32 = arith.constant 0 : i32
    %c0_i32_0 = arith.constant 0 : i32
    return %arg0, %c0_i32 : i32, i32
  }
}

</mosaic_0001>

<bundles_post_ra>
// kernel: tpu_custom_call.1
= control target key start
LH: loop header
LB: loop body
LE: loop exit
PB: predicated region body
PF: predicated region fallthrough
CT: control target
= control target key end

     0   :  { %v445_v2 = vmov 0.0|0.0   ;;  %vm446_vm0 = vmmov 0   ;;  %v447_v4 = vmov 0.0   ;;  %s557_s0 = inlined_call_operand.vmem [shape: f32[8,16], index: 0, kind: input, shape index: {}]   ;;  %s558_s1 = inlined_call_operand.vmem [shape: f32[8,4], index: 1, kind: input, shape index: {}]   ;;  %s559_s2 = inlined_call_operand.vmem [shape: f32[16,32], index: 2, kind: input, shape index: {}]   ;;  %s560_s3 = inlined_call_operand.vmem [shape: f32[1,32], index: 3, kind: input, shape index: {}]   ;;  %s561_s4 = inlined_call_operand.vmem [shape: f32[32,32], index: 4, kind: input, shape index: {}]   ;;  %s562_s5 = inlined_call_operand.vmem [shape: f32[1,32], index: 5, kind: input, shape index: {}]   ;;  %s563_s6 = inlined_call_operand.vmem [shape: f32[32,8], index: 6, kind: input, shape index: {}]   ;;  %s564_s7 = inlined_call_operand.vmem [shape: f32[1,8], index: 7, kind: input, shape index: {}]   ;;  %s565_s8 = inlined_call_operand.hbm [shape: f32[8,13], index: 8, kind: output, shape index: {}]  }
   0x1   :  { %v31_v0 = vld [vmem:[%s559_s2] sm:$0xff]  ;;  %v32_v1 = vld [vmem:[%s559_s2 + $0x8] sm:$0xff]  ;;  %393 = vmatprep.subr.bf16.mxu0 %v445_v2  ;;  %368 = vmatprep.mubr.msk.f32.mxu0 %vm446_vm0, %v447_v4 }
   0x2   :  { %v394_v3 = vpack.c.bf16 %v32_v1, %v31_v0  ;;  %v115_v5 = vld [vmem:[%s561_s4] sm:$0xff]  ;;  %v116_v6 = vld [vmem:[%s561_s4 + $0x8] sm:$0xff]  ;;  %396 = vmatprep.subr.bf16.mxu1 %v445_v2  ;;  %379 = vmatprep.mubr.msk.f32.mxu1 %vm446_vm0, %v447_v4 }
   0x3   :  { %v397_v7 = vpack.c.bf16 %v116_v6, %v115_v5 }
   0x4   :  { %13 = vsyncpa [#allocation3], 0  ;;  %395 = vmatpush3.bf16.msra.mxu0 %v394_v3  ;;  %v30_v8 = vld [vmem:[%s557_s0] sm:$0xff]  ;;  %vm40_vm1 = vcmask 130048   ;;  %v117_v9 = vld [vmem:[%s561_s4 + $0x10] sm:$0xff]  ;;  %vm126_vm2 = vcmask 261120  }
   0x5   :  { %398 = vmatpush3.bf16.msra.mxu1 %v397_v7  ;;  %402 = vmatprep.subr.bf16.mxu0 %v445_v2  ;;  %v118_v10 = vld [vmem:[%s561_s4 + $0x18] sm:$0xff]  ;;  %v201_v12 = vld [vmem:[%s563_s6] sm:$0xff]  ;;  %v202_v13 = vld [vmem:[%s563_s6 + $0x8] sm:$0xff]  ;;  %vm285_vm3 = vcmask 64512   ;;  %vm324_vm4 = vcmask 31744   ;;  %vm308_vm5 = vcmask 97344  }
   0x6   :  { %399 = vmatprep.subr.bf16.mxu1 %v445_v2  ;;  %v400_v11 = vpack.c.bf16 %v118_v10, %v117_v9  ;;  %v403_v14 = vpack.c.bf16 %v202_v13, %v201_v12  ;;  %v344_v15 = vld [vmem:[%s560_s3] ss:$0 sm:$0xff]  ;;  %v203_v20 = vld [vmem:[%s563_s6 + $0x10] sm:$0xff]  ;;  %v204_v21 = vld [vmem:[%s563_s6 + $0x18] sm:$0xff]  ;;  %s448_s3 = smov 4   ;;  %s451_s6 = smov [#allocation2]  }
   0x7   :  { %369 = vmatmul.mubr.msk.f32.vlgmr.msra.gmra.mrb[0].mxu0 %vm40_vm1, %v30_v8  ;;  %v406_v22 = vpack.c.bf16 %v204_v21, %v203_v20  ;;  %v291_v23 = vld [vmem:[%s558_s1] sm:$0xff]  ;;  %s449_s1 = smov 124   ;;  %vm328_vm6 = vcmask 105568  }
   0x8   :  { %390 = vmatprep.mubr.msk.f32.mxu0 %vm446_vm0, %v447_v4  ;;  %404 = vmatpush3.bf16.msra.mxu0 %v403_v14  ;;  %v346_v24 = vld [vmem:[%s562_s5] ss:$0 sm:$0xff]  ;;  %s450_s5 = smov 8   ;;  %v310_v45 = vmul.f32 -0.5, %v291_v23 }
   0x9   :  { %401 = vmatpush3.bf16.msra.mxu1 %v400_v11  ;;  %405 = vmatprep.subr.bf16.mxu0 %v445_v2  ;;  %v348_v29 = vld [vmem:[%s564_s7] ss:$0 sm:$0xff]  ;;  %s336_s7 = sshll.u32 %s451_s6, 4  ;;  %s337_s7 = int_to_ptr.vmem [resolvable:$true] %s336_s7 }
   0xa   :  { %293 = vrot.lane.b32.xlu0 %v291_v23, %s448_s3  ;;  %v311_v46 = vmul.f32 %v310_v45, %v291_v23  ;;  %s421_s10 = scalar_lea.vmem %s337_s7, 128  ;;  %p426_p1 = scmp.lt.s32.totalorder %s337_s7, %s337_s7 }
   0xb   :  { %p422_p0 = scmp.ne.s32.totalorder %s337_s7, %s421_s10  ;;  %p427_p2 = scmp.lt.s32.totalorder %s421_s10, %s421_s10 }
   0xc   :  { %407 = vmatpush3.bf16.msra.mxu0 %v406_v22 }
   0xd   :  { %p428_p3 = por %p427_p2, %p426_p1 }
   0xf   :  { %p429_p4 = pnand %p428_p3, %p422_p0 }
  0x7c   :  { %v294_v36 = vpop.permute.xlu0 %293 }
  0xda   :  { %v110_v16 = vpop.f32.mrb[0].mxu0 }
  0xdb   :  { %v111_v17 = vadd.f32 %v344_v15, %v110_v16  ;;  %v370_v18 = vpop.f32.mrb[1].mxu0 }
  0xdd   :  { %v114_v19 = vmax.f32 %v111_v17, 0.0 }
  0xdf   :  { %380 = vmatmul.mubr.msk.f32.vlgmr.msra.gmra.mrb[0].mxu1 %vm126_vm2, %v114_v19 }
 0x1b2   :  { %v196_v25 = vpop.f32.mrb[0].mxu1 }
 0x1b3   :  { %v197_v26 = vadd.f32 %v346_v24, %v196_v25  ;;  %v381_v27 = vpop.f32.mrb[1].mxu1 }
 0x1b5   :  { %v200_v28 = vmax.f32 %v197_v26, 0.0 }
 0x1b7   :  { %391 = vmatmul.mubr.msk.f32.vlgmr.msra.gmra.mrb[2].mxu0 %vm126_vm2, %v200_v28 }
 0x28a   :  { %v281_v30 = vpop.f32.mrb[2].mxu0 }
 0x28b   :  { %v282_v31 = vadd.f32 %v348_v29, %v281_v30  ;;  %v392_v32 = vpop.f32.mrb[3].mxu0 }
 0x28d   :  { %v287_v33 = vmax.f32 %v282_v31, -5.0  ;;  %286 = vst.msk [vmem:[#allocation2] sm:$0xff] %vm285_vm3, %v282_v31 }
 0x28f   :  { %v288_v34 = vmin.f32 %v287_v33, 2.0 }
 0x291   :  { %313 = vrot.lane.b32.xlu1 %v288_v34, %s449_s1  ;;  %v289_v35 = vmul.f32 1.442695, %v288_v34 }
 0x293   :  { %415 = vpow2.f32 %v289_v35 }
 0x29d   :  { %v416_v37 = vpop.eup %415 }
 0x29e   :  { %v296_v38 = vmul.f32 %v416_v37, %v294_v36 }
 0x2a0   :  { %298 = vrot.lane.b32.xlu0 %v296_v38, %s449_s1 }
 0x303   :  { %v314_v47 = vpop.permute.xlu1 %313 }
 0x304   :  { %v316_v48 = vsub.f32 %v311_v46, %v314_v47 }
 0x306   :  { %v350_v50 = vadd.f32 -0.9189385, %v316_v48 }
 0x312   :  { %v299_v39 = vpop.permute.xlu0 %298 }
 0x313   :  { %v301_v40 = vadd.f32 %v299_v39, %v282_v31 }
 0x315   :  { %417 = vtanh.f32 %v301_v40 }
 0x31f   :  { %v418_v41 = vpop.eup %417 }
 0x320   :  { %305 = vrot.lane.b32.xlu0 %v418_v41, %s450_s5  ;;  %v318_v42 = vmul.f32 %v418_v41, %v418_v41 }
 0x322   :  { %v319_v43 = vsub.f32 1.0, %v318_v42 }
 0x324   :  { %v320_v44 = vadd.f32 1e-06, %v319_v43 }
 0x326   :  { %419 = vlog2.f32 %v320_v44 }
 0x330   :  { %v420_v49 = vpop.eup %419 }
 0x331   :  { %v322_v51 = vmul.f32 0.6931472, %v420_v49 }
 0x333   :  { %v323_v52 = vsub.f32 %v350_v50, %v322_v51 }
 0x335   :  { %v325_v53 = vsel %vm324_vm4, %v323_v52, 0.0 }
 0x336   :  { %326 = vadd.xlane.f32.xlu1 %v325_v53 }
 0x392   :  { %v306_v54 = vpop.permute.xlu0 %305 }
 0x393   :  { %309 = vst.msk [vmem:[#allocation2] sm:$0xff] %vm308_vm5, %v306_v54 }
 0x3c3   :  { %v327_v55 = vpop.xlane.xlu1 %326 }
 0x3c4   :  { %329 = vst.msk [vmem:[#allocation2] sm:$0xff] %vm328_vm6, %v327_v55 }
 0x3c5   :  { %432 = shalt.err (!%p429_p4)
}
 0x3c6   :  { %s433_s2 = scalar_lea.hbm %s565_s8, 128 }
 0x3c7   :  { %p434_p5 = scmp.ne.s32.totalorder %s565_s8, %s433_s2  ;;  %p437_p6 = scmp.lt.u32.totalorder %s433_s2, %s565_s8 }
 0x3c9   :  { %p439_p7 = pnand %p437_p6, %p434_p5 }
 0x3cb   :  { %442 = shalt.err (!%p439_p7)
}
 0x3cc   :  { %339 = dma.vmem_to_hbm [thread:$0]  %s337_s7, 128, %s565_s8, [#allocation3]  }
 0x3cd   :  { %443 = dma.done.wait [#allocation3], 128  }
 0x3ce   :  { %444 = vsyncadd [#allocation3], 4294967168 }
 0x3cf   :  { %343 = vsyncpa [#allocation3], 1 }

</bundles_post_ra>
